<compile_context>
chip_gen: v6e
topology: v6e:2x2x1
jax: 0.10.0
libtpu: 0.0.40
codegen_flags: <defaults>
</compile_context>

<pallas_src>
import functools

import jax
import jax.numpy as jnp
from jax.experimental import pallas as pl
from jax.experimental.pallas import tpu as pltpu


def _make_hopfield_kernel(compute_dtype):
    def kernel(x_ref, w_ref, o_ref):
        # x_ref : (TILE_N, d)   VMEM
        # w_ref : (2d, d)       VMEM (resident across grid steps)
        # o_ref : (TILE_N, 2d)  VMEM
        x = x_ref[...].astype(jnp.float32)

        # F.normalize(x, dim=1): x / max(||x||_2, 1e-12)
        # == x * rsqrt(max(||x||^2, 1e-24))  (clamp on the squared norm)
        sq_norm = jnp.sum(x * x, axis=1, keepdims=True)
        x_hat = x * jax.lax.rsqrt(jnp.maximum(sq_norm, 1e-24))

        # (w @ x_hat.T).T == x_hat @ w.T  -- single MXU matmul, trans_b handled
        # natively via dot_general contracting dims (1, 1); no host-side w.T.
        out = jax.lax.dot_general(
            x_hat.astype(compute_dtype),
            w_ref[...].astype(compute_dtype),
            dimension_numbers=(((1,), (1,)), ((), ())),
            preferred_element_type=jnp.float32,
        )
        o_ref[...] = out.astype(o_ref.dtype)

    return kernel


def _pick_tile_n(n, d, two_d, *, vmem_budget_bytes=32 * 1024 * 1024, max_tile=1024):
    """Pick a row-tile size that fits a conservative VMEM budget (v7x-safe)."""
    itemsize = 4  # f32
    w_bytes = two_d * d * itemsize          # resident weight
    per_row = (d + two_d) * itemsize * 2    # x-tile + out-tile, double-buffered
    avail = max(vmem_budget_bytes - w_bytes, per_row * 8)
    tile = min(max_tile, n, avail // per_row)
    if tile >= n:
        return n                             # single block: full-dim shape is legal
    return max(8, (tile // 8) * 8)           # must be a multiple of 8 when tiling


def hopfield_forward(x, w, *, compute_dtype=jnp.float32, tile_n=None):
    """x: (N, d) float32, w: (2d, d) float32 -> (N, 2d) float32.

    compute_dtype: dtype used for the MXU matmul operands (pass jnp.bfloat16 to
    trade precision for ~2x MXU/bandwidth on v6e/v7x; accumulation stays f32).
    """
    n, d = x.shape
    two_d = w.shape[0]
    assert w.shape == (two_d, d)

    if tile_n is None:
        tile_n = _pick_tile_n(n, d, two_d)
    tile_n = min(tile_n, n)
    if tile_n != n:
        tile_n = max(8, (tile_n // 8) * 8)
    grid = (pl.cdiv(n, tile_n),)

    cost = pl.CostEstimate(
        flops=2 * n * d * two_d + 3 * n * d,
        transcendentals=n,                      # one rsqrt per row
        bytes_accessed=4 * (n * d + d * two_d + n * two_d),
    )

    return pl.pallas_call(
        _make_hopfield_kernel(compute_dtype),
        out_shape=jax.ShapeDtypeStruct((n, two_d), jnp.float32),
        grid_spec=pltpu.PrefetchScalarGridSpec(
            num_scalar_prefetch=0,
            grid=grid,
            in_specs=[
                pl.BlockSpec((tile_n, d), lambda i: (i, 0)),
                pl.BlockSpec((two_d, d), lambda i: (0, 0)),   # constant -> resident
            ],
            out_specs=pl.BlockSpec((tile_n, two_d), lambda i: (i, 0)),
        ),
        compiler_params=pltpu.CompilerParams(
            dimension_semantics=("parallel",)),
        cost_estimate=cost,
    )(x, w)


def hopfield_forward_ref(x, w):
    """Pure-JAX reference of the PyTorch forward (F.normalize + (w @ x.T).T)."""
    norm = jnp.sqrt(jnp.sum(x * x, axis=1, keepdims=True))
    x_hat = x / jnp.maximum(norm, 1e-12)
    return (w @ x_hat.T).T


def kernel_fn(u, v, w):
    """forward(u) @ forward(v).T, composed from the Pallas forward."""
    # TODO(synk): fuse the second matmul into an output-stationary Pallas grid to
    # avoid materializing the (N, 2d) intermediates in HBM for very large N.
    return hopfield_forward(u, w) @ hopfield_forward(v, w).T


if __name__ == "__main__":
    key = jax.random.PRNGKey(0)
    k_x, k_w, k_x2, k_w2 = jax.random.split(key, 4)

    # Case 1: lane-dense output (2d = 128), tiled grid over N.
    d1, n1 = 64, 1024
    x1 = jax.random.normal(k_x, (n1, d1), dtype=jnp.float32)
    w1 = jax.random.normal(k_w, (2 * d1, d1), dtype=jnp.float32)
    out1 = jax.block_until_ready(hopfield_forward(x1, w1, tile_n=512))
    ref1 = hopfield_forward_ref(x1, w1)
    assert out1.shape == (n1, 2 * d1)
    assert jnp.allclose(out1, ref1, atol=1e-4, rtol=1e-4), "mismatch vs reference (case 1)"

    # Case 2: small shape matching the original demo (single-block path).
    d2, n2 = 32, 8
    x2 = jax.random.normal(k_x2, (n2, d2), dtype=jnp.float32)
    w2 = jax.random.normal(k_w2, (2 * d2, d2), dtype=jnp.float32)
    out2 = jax.block_until_ready(hopfield_forward(x2, w2))
    ref2 = hopfield_forward_ref(x2, w2)
    assert out2.shape == (n2, 2 * d2)
    assert jnp.allclose(out2, ref2, atol=1e-4, rtol=1e-4), "mismatch vs reference (case 2)"

    # kernel_fn composition: forward(u) @ forward(v).T
    kmat = jax.block_until_ready(kernel_fn(x2, x2, w2))
    kmat_ref = hopfield_forward_ref(x2, w2) @ hopfield_forward_ref(x2, w2).T
    assert jnp.allclose(kmat, kmat_ref, atol=1e-3, rtol=1e-3), "mismatch vs reference (kernel_fn)"

    print("KERNEL_OK")
</pallas_src>

<mosaic_0001>
module attributes {stable_mosaic.version = 11 : i64} {
  func.func @kernel(%arg0: i32, %arg1: memref<512x64xf32, #tpu.memory_space<vmem>>, %arg2: memref<128x64xf32, #tpu.memory_space<vmem>>, %arg3: memref<512x128xf32, #tpu.memory_space<vmem>>) attributes {dimension_semantics = [#tpu.dimension_semantics<parallel>], iteration_bounds = array<i64: 2>, scalar_prefetch = 0 : i64, scratch_operands = 0 : i64, tpu.core_type = #tpu.core_type<tc>, window_params = [{transform_indices = @transform_0, window_bounds = array<i64: 512, 64>}, {pipeline_mode = #tpu.pipeline_mode<synchronous>, transform_indices = @transform_1, window_bounds = array<i64: 128, 64>}, {transform_indices = @transform_2, window_bounds = array<i64: 512, 128>}]} {
    %c0 = arith.constant 0 : index
    %c0_0 = arith.constant 0 : index
    %0 = vector.load %arg1[%c0, %c0_0] : memref<512x64xf32, #tpu.memory_space<vmem>>, vector<512x64xf32>
    %1 = arith.mulf %0, %0 : vector<512x64xf32>
    %cst = arith.constant dense<0.000000e+00> : vector<512xf32>
    %2 = vector.multi_reduction <add>, %1, %cst [1] : vector<512x64xf32> to vector<512xf32>
    %3 = vector.shape_cast %2 : vector<512xf32> to vector<512x1xf32>
    %cst_1 = arith.constant 1.000000e-24 : f32
    %4 = vector.broadcast %cst_1 : f32 to vector<512x1xf32>
    %5 = arith.maximumf %3, %4 : vector<512x1xf32>
    %6 = math.rsqrt %5 : vector<512x1xf32>
    %7 = vector.broadcast %6 : vector<512x1xf32> to vector<512x64xf32>
    %8 = arith.mulf %0, %7 : vector<512x64xf32>
    %c0_2 = arith.constant 0 : index
    %c0_3 = arith.constant 0 : index
    %9 = vector.load %arg2[%c0_2, %c0_3] : memref<128x64xf32, #tpu.memory_space<vmem>>, vector<128x64xf32>
    %cst_4 = arith.constant dense<0.000000e+00> : vector<512x128xf32>
    %10 = tpu.matmul %8, %9, %cst_4 {dimension_numbers = #tpu.dot_dimension_numbers<[1], [1], [0], [0], [0, 0, 1, 0], [], []>} : vector<512x64xf32>, vector<128x64xf32>, vector<512x128xf32> -> vector<512x128xf32>
    %c0_5 = arith.constant 0 : index
    %c0_6 = arith.constant 0 : index
    %11 = vector.load %arg3[%c0_5, %c0_6] : memref<512x128xf32, #tpu.memory_space<vmem>>, vector<512x128xf32>
    tpu.vector_store %arg3[%c0_5, %c0_6], %10 {strides = array<i32>} : memref<512x128xf32, #tpu.memory_space<vmem>>, vector<512x128xf32>,
    return
  }
  func.func @transform_0(%arg0: i32) -> (i32, i32) {
    %c0_i32 = arith.constant 0 : i32
    %c0_i32_0 = arith.constant 0 : i32
    return %arg0, %c0_i32 : i32, i32
  }
  func.func @transform_1(%arg0: i32) -> (i32, i32) {
    %c0_i32 = arith.constant 0 : i32
    %c0_i32_0 = arith.constant 0 : i32
    %c0_i32_1 = arith.constant 0 : i32
    return %c0_i32, %c0_i32_0 : i32, i32
  }
  func.func @transform_2(%arg0: i32) -> (i32, i32) {
    %c0_i32 = arith.constant 0 : i32
    %c0_i32_0 = arith.constant 0 : i32
    return %arg0, %c0_i32 : i32, i32
  }
}

</mosaic_0001>

<bundles_post_ra>
// kernel: tpu_custom_call.1
= control target key start
LH: loop header
LB: loop body
LE: loop exit
PB: predicated region body
PF: predicated region fallthrough
CT: control target
= control target key end

     0   :  { %7 = vsyncpa [#allocation3], 0  ;;  %s2819_s0 = inlined_call_operand.vmem [shape: f32[1024,64], index: 0, kind: input, shape index: {}]   ;;  %s2820_s1 = inlined_call_operand.vmem [shape: f32[128,64], index: 1, kind: input, shape index: {}]   ;;  %s2821_s2 = inlined_call_operand.hbm [shape: f32[1024,128], index: 2, kind: output, shape index: {}]  }
   0x1   :  { %9 = vsyncpa [#allocation3 + $0x1], 0  ;;  %s2021_s9 = smov 0   ;;  %s2023_s10 = smov 0  }
   0x2   :  { %s2025_s11 = smov 0   ;;  %s2027_s12 = smov 0  }
   0x3 LB: > { %s2042_s13 = sadd.s32 4294967295, %s2001_s12   ;;  %s1439_s14 = sadd.s32 4294967294, %s2001_s12   ;;  %s2001_s12 = sphi %s2027_s12, %s2875_s12   ;;  %s1997_s11 = sphi %s2025_s11, %s2874_s11   ;;  %s1993_s10 = sphi %s2023_s10, %s2873_s10   ;;  %s1989_s9 = sphi %s2021_s9, %s2872_s9  }
   0x4   : > { %s2046_s15 = sadd.s32 1, %s2001_s12   ;;  %s69_s16 = sadd.s32 1, %s1997_s11 }
   0x5   : > { %s66_s17 = ssub.s32 %s2001_s12, %s2046_s15  ;;  %p79_p0 = scmp.ne.s32.totalorder %s1997_s11, %s1993_s10 }
   0x6   : > { %p67_p1 = scmp.eq.s32.totalorder %s66_s17, 0  ;;  %p80_p2 = scmp.eq.s32.totalorder %s2042_s13, 1 }
   0x7   : > { %p85_p3 = scmp.ne.s32.totalorder %s1993_s10, %s1989_s9  ;;  %p86_p4 = scmp.eq.s32.totalorder %s1439_s14, 1 }
   0x8   : > { %s2057_s18 = scalar_select %p67_p1, %s1997_s11, %s69_s16  }
   0x9   : > { %p2059_p5 = por %p80_p2, %p79_p0  ;;  %p2063_p6 = por %p86_p4, %p85_p3 }
   0xa   : > { %p1442_p7 = scmp.ge.s32.totalorder %s2001_s12, 1  ;;  %p116_p8 = scmp.lt.s32.totalorder %s2001_s12, 3 }
   0xc   : > { %p117_p9 = pnand %p1442_p7, %p116_p8 }
   0xe   : > { %120 = sbr.rel (%p117_p9) target bundleno = 520 (0x208), region = 28 }
  0x13   : > { %s1444_s21 = sshll.u32 %s2042_s13, 6  ;;  %vm273_vm0 = vcmask 523264   ;;  %v673_v0 = vld [vmem:[%s2820_s1 + $0x78] sm:$0xff]  ;;  %v672_v1 = vld [vmem:[%s2820_s1 + $0x70] sm:$0xff]  ;;  %v671_v2 = vld [vmem:[%s2820_s1 + $0x68] sm:$0xff]  ;;  %s1531_s23 = sshll.u32 %s2042_s13, 13 }
  0x14   : > { %p139_p10 = scmp.lt.s32.totalorder %s1444_s21, 127  ;;  %1612 = vmatprep.subr.msk.mxu0 %vm273_vm0, %v673_v0  ;;  %1740 = vmatprep.subr.msk.mxu1 %vm273_vm0, %v673_v0  ;;  %v670_v13 = vld [vmem:[%s2820_s1 + $0x60] sm:$0xff]  ;;  %v669_v22 = vld [vmem:[%s2820_s1 + $0x58] sm:$0xff]  ;;  %v668_v29 = vld [vmem:[%s2820_s1 + $0x50] sm:$0xff]  ;;  %s2770_s27 = scalar_lea.hbm %s2821_s2, %s1531_s23 }
  0x15   : > { %1613 = vmatpush3.xpose.msk.msra.mxu0 %vm273_vm0, %v673_v0  ;;  %1756 = vmatpush3.xpose.msk.msra.mxu1 %vm273_vm0, %v673_v0  ;;  %v667_v36 = vld [vmem:[%s2820_s1 + $0x48] sm:$0xff]  ;;  %v666_v43 = vld [vmem:[%s2820_s1 + $0x40] sm:$0xff]  ;;  %v665_v50 = vld [vmem:[%s2820_s1 + $0x38] sm:$0xff]  ;;  %s2003_s29 = smov [#allocation2]  }
  0x16   : > { %s2877_s21 = smov (!%p139_p10, %s1444_s21), 127  ;;  %1614 = vmatprep.subr.msk.mxu0 %vm273_vm0, %v672_v1  ;;  %1741 = vmatprep.subr.msk.mxu1 %vm273_vm0, %v672_v1  ;;  %v664_v57 = vld [vmem:[%s2820_s1 + $0x30] sm:$0xff]  ;;  %v663_v0 = vld [vmem:[%s2820_s1 + $0x28] sm:$0xff]  ;;  %s1945_s30 = sshll.u32 %s2003_s29, 4  ;;  %s1946_s30 = int_to_ptr.vmem [resolvable:$false] %s1945_s30 }
  0x17   : > { %s1445_s28 = sshll.u32 %s2877_s21, 3  ;;  %s1947_s4 = scalar_lea.vmem %s1946_s30, 16384 }
  0x18   : > { %s2088_s3 = scalar_lea.vmem %s2819_s0, %s1445_s28 }
  0x19   : > { %1615 = vmatpush3.xpose.msk.msra.mxu0 %vm273_vm0, %v672_v1  ;;  %1757 = vmatpush3.xpose.msk.msra.mxu1 %vm273_vm0, %v672_v1  ;;  %v2093_v3 = vld [vmem:[%s2088_s3 + $0x8] sm:$0xff]  ;;  %v2096_v4 = vld [vmem:[%s2088_s3] sm:$0xff]  ;;  %v2115_v11 = vld [vmem:[%s2088_s3 + $0x110] sm:$0xff] }
  0x1a   : > { %v2099_v5 = vld [vmem:[%s2088_s3 + $0x108] sm:$0xff]  ;;  %1616 = vmatprep.subr.msk.mxu0 %vm273_vm0, %v671_v2  ;;  %1742 = vmatprep.subr.msk.mxu1 %vm273_vm0, %v671_v2  ;;  %v210_v6 = vmul.f32 %v2093_v3, %v2093_v3  ;;  %v209_v7 = vmul.f32 %v2096_v4, %v2096_v4  ;;  %v2110_v9 = vld [vmem:[%s2088_s3 + $0x100] sm:$0xff]  ;;  %v2118_v12 = vld [vmem:[%s2088_s3 + $0x10] sm:$0xff]  ;;  %v243_v18 = vmul.f32 %v2115_v11, %v2115_v11 }
  0x1b   : > { %v242_v8 = vmul.f32 %v2099_v5, %v2099_v5  ;;  %v241_v10 = vmul.f32 %v2110_v9, %v2110_v9  ;;  %v211_v19 = vmul.f32 %v2118_v12, %v2118_v12  ;;  %v2136_v20 = vld [vmem:[%s2088_s3 + $0x118] sm:$0xff]  ;;  %v2155_v27 = vld [vmem:[%s2088_s3 + $0x120] sm:$0xff]  ;;  %v2174_v34 = vld [vmem:[%s2088_s3 + $0x128] sm:$0xff] }
  0x1c   : > { %v277_v14 = vsel %vm273_vm0, %v210_v6, 0.0  ;;  %v274_v15 = vsel %vm273_vm0, %v209_v7, 0.0  ;;  %v2139_v21 = vld [vmem:[%s2088_s3 + $0x18] sm:$0xff]  ;;  %v376_v23 = vsel %vm273_vm0, %v243_v18, 0.0  ;;  %v244_v25 = vmul.f32 %v2136_v20, %v2136_v20  ;;  %v2158_v28 = vld [vmem:[%s2088_s3 + $0x20] sm:$0xff]  ;;  %v2177_v35 = vld [vmem:[%s2088_s3 + $0x28] sm:$0xff] }
  0x1d   : > { %1617 = vmatpush3.xpose.msk.msra.mxu0 %vm273_vm0, %v671_v2  ;;  %1758 = vmatpush3.xpose.msk.msra.mxu1 %vm273_vm0, %v671_v2  ;;  %v373_v16 = vsel %vm273_vm0, %v242_v8, 0.0  ;;  %v370_v17 = vsel %vm273_vm0, %v241_v10, 0.0  ;;  %v280_v24 = vsel %vm273_vm0, %v211_v19, 0.0  ;;  %v212_v26 = vmul.f32 %v2139_v21, %v2139_v21  ;;  %v2193_v41 = vld [vmem:[%s2088_s3 + $0x130] sm:$0xff]  ;;  %v2212_v48 = vld [vmem:[%s2088_s3 + $0x138] sm:$0xff]  ;;  %v2231_v55 = vld [vmem:[%s2088_s3 + $0x140] sm:$0xff] }
  0x1e   : > { %278 = vadd.xlane.f32.xlu1 %v277_v14  ;;  %275 = vadd.xlane.f32.xlu0 %v274_v15  ;;  %v379_v30 = vsel %vm273_vm0, %v244_v25, 0.0  ;;  %v245_v32 = vmul.f32 %v2155_v27, %v2155_v27  ;;  %v213_v33 = vmul.f32 %v2158_v28, %v2158_v28  ;;  %v246_v39 = vmul.f32 %v2174_v34, %v2174_v34  ;;  %v2196_v42 = vld [vmem:[%s2088_s3 + $0x30] sm:$0xff]  ;;  %v2215_v49 = vld [vmem:[%s2088_s3 + $0x38] sm:$0xff]  ;;  %v2234_v56 = vld [vmem:[%s2088_s3 + $0x40] sm:$0xff] }
  0x1f   : > { %1618 = vmatprep.subr.msk.mxu0 %vm273_vm0, %v670_v13  ;;  %1743 = vmatprep.subr.msk.mxu1 %vm273_vm0, %v670_v13  ;;  %v283_v31 = vsel %vm273_vm0, %v212_v26, 0.0  ;;  %v214_v40 = vmul.f32 %v2177_v35, %v2177_v35  ;;  %v247_v46 = vmul.f32 %v2193_v41, %v2193_v41  ;;  %v215_v47 = vmul.f32 %v2196_v42, %v2196_v42  ;;  %v2250_v62 = vld [vmem:[%s2088_s3 + $0x148] sm:$0xff]  ;;  %v2269_v8 = vld [vmem:[%s2088_s3 + $0x150] sm:$0xff]  ;;  %v2288_v18 = vld [vmem:[%s2088_s3 + $0x158] sm:$0xff] }
  0x20   : > { %v382_v37 = vsel %vm273_vm0, %v245_v32, 0.0  ;;  %v286_v38 = vsel %vm273_vm0, %v213_v33, 0.0  ;;  %v385_v44 = vsel %vm273_vm0, %v246_v39, 0.0  ;;  %v248_v53 = vmul.f32 %v2212_v48, %v2212_v48  ;;  %v2253_v63 = vld [vmem:[%s2088_s3 + $0x48] sm:$0xff]  ;;  %v2272_v10 = vld [vmem:[%s2088_s3 + $0x50] sm:$0xff]  ;;  %v2291_v19 = vld [vmem:[%s2088_s3 + $0x58] sm:$0xff] }
  0x21   : > { %1619 = vmatpush3.xpose.msk.msra.mxu0 %vm273_vm0, %v670_v13  ;;  %1759 = vmatpush3.xpose.msk.msra.mxu1 %vm273_vm0, %v670_v13  ;;  %v289_v45 = vsel %vm273_vm0, %v214_v40, 0.0  ;;  %v388_v51 = vsel %vm273_vm0, %v247_v46, 0.0  ;;  %v292_v52 = vsel %vm273_vm0, %v215_v47, 0.0  ;;  %v216_v54 = vmul.f32 %v2215_v49, %v2215_v49  ;;  %v662_v13 = vld [vmem:[%s2820_s1 + $0x20] sm:$0xff]  ;;  %v2329_v39 = vld [vmem:[%s2088_s3 + $0x68] sm:$0xff]  ;;  %v2345_v47 = vld [vmem:[%s2088_s3 + $0x170] sm:$0xff] }
  0x22   : > { %374 = vadd.xlane.f32.xlu1 %v373_v16  ;;  %371 = vadd.xlane.f32.xlu0 %v370_v17  ;;  %v391_v58 = vsel %vm273_vm0, %v248_v53, 0.0  ;;  %v249_v60 = vmul.f32 %v2231_v55, %v2231_v55  ;;  %v217_v61 = vmul.f32 %v2234_v56, %v2234_v56  ;;  %v250_v6 = vmul.f32 %v2250_v62, %v2250_v62  ;;  %v659_v40 = vld [vmem:[%s2820_s1 + $0x8] sm:$0xff] }
  0x23   : > { %1620 = vmatprep.subr.msk.mxu0 %vm273_vm0, %v669_v22  ;;  %1744 = vmatprep.subr.msk.mxu1 %vm273_vm0, %v669_v22  ;;  %v295_v59 = vsel %vm273_vm0, %v216_v54, 0.0  ;;  %v218_v7 = vmul.f32 %v2253_v63, %v2253_v63  ;;  %v251_v16 = vmul.f32 %v2269_v8, %v2269_v8  ;;  %v219_v17 = vmul.f32 %v2272_v10, %v2272_v10 }
  0x24   : > { %v394_v1 = vsel %vm273_vm0, %v249_v60, 0.0  ;;  %v298_v2 = vsel %vm273_vm0, %v217_v61, 0.0  ;;  %v397_v14 = vsel %vm273_vm0, %v250_v6, 0.0  ;;  %v252_v25 = vmul.f32 %v2288_v18, %v2288_v18  ;;  %v2381_v6 = vld [vmem:[%s2088_s3 + $0x80] sm:$0xff] }
  0x25   : > { %1621 = vmatpush3.xpose.msk.msra.mxu0 %vm273_vm0, %v669_v22  ;;  %1760 = vmatpush3.xpose.msk.msra.mxu1 %vm273_vm0, %v669_v22  ;;  %v301_v15 = vsel %vm273_vm0, %v218_v7, 0.0  ;;  %v661_v22 = vld [vmem:[%s2820_s1 + $0x18] sm:$0xff]  ;;  %v220_v26 = vmul.f32 %v2291_v19, %v2291_v19  ;;  %v222_v46 = vmul.f32 %v2329_v39, %v2329_v39  ;;  %v255_v54 = vmul.f32 %v2345_v47, %v2345_v47 }
  0x26   : > { %377 = vadd.xlane.f32.xlu1 %v376_v23  ;;  %281 = vadd.xlane.f32.xlu0 %v280_v24  ;;  %v400_v23 = vsel %vm273_vm0, %v251_v16, 0.0  ;;  %v304_v24 = vsel %vm273_vm0, %v219_v17, 0.0  ;;  %v403_v32 = vsel %vm273_vm0, %v252_v25, 0.0  ;;  %v2390_v16 = vld [vmem:[%s2088_s3 + $0x188] sm:$0xff] }
  0x27   : > { %1622 = vmatprep.subr.msk.mxu0 %vm273_vm0, %v668_v29  ;;  %1745 = vmatprep.subr.msk.mxu1 %vm273_vm0, %v668_v29  ;;  %v307_v33 = vsel %vm273_vm0, %v220_v26, 0.0  ;;  %v313_v53 = vsel %vm273_vm0, %v222_v46, 0.0  ;;  %v412_v60 = vsel %vm273_vm0, %v255_v54, 0.0  ;;  %v2393_v17 = vld [vmem:[%s2088_s3 + $0x88] sm:$0xff]  ;;  %v2402_v26 = vld [vmem:[%s2088_s3 + $0x190] sm:$0xff] }
  0x28   : > { %v226_v25 = vmul.f32 %v2393_v17, %v2393_v17 }
  0x29   : > { %1623 = vmatpush3.xpose.msk.msra.mxu0 %vm273_vm0, %v668_v29  ;;  %1761 = vmatpush3.xpose.msk.msra.mxu1 %vm273_vm0, %v668_v29  ;;  %v2307_v29 = vld [vmem:[%s2088_s3 + $0x160] sm:$0xff] }
  0x2a   : > { %380 = vadd.xlane.f32.xlu1 %v379_v30  ;;  %284 = vadd.xlane.f32.xlu0 %v283_v31  ;;  %v2310_v30 = vld [vmem:[%s2088_s3 + $0x60] sm:$0xff]  ;;  %v660_v31 = vld [vmem:[%s2820_s1 + $0x10] sm:$0xff] }
  0x2b   : > { %1624 = vmatprep.subr.msk.mxu0 %vm273_vm0, %v667_v36  ;;  %1746 = vmatprep.subr.msk.mxu1 %vm273_vm0, %v667_v36 }
  0x2d   : > { %1625 = vmatpush3.xpose.msk.msra.mxu0 %vm273_vm0, %v667_v36  ;;  %1762 = vmatpush3.xpose.msk.msra.mxu1 %vm273_vm0, %v667_v36  ;;  %v253_v36 = vmul.f32 %v2307_v29, %v2307_v29 }
  0x2e   : > { %383 = vadd.xlane.f32.xlu1 %v382_v37  ;;  %287 = vadd.xlane.f32.xlu0 %v286_v38  ;;  %v221_v37 = vmul.f32 %v2310_v30, %v2310_v30  ;;  %v2326_v38 = vld [vmem:[%s2088_s3 + $0x168] sm:$0xff] }
  0x2f   : > { %1626 = vmatprep.subr.msk.mxu0 %vm273_vm0, %v666_v43  ;;  %1747 = vmatprep.subr.msk.mxu1 %vm273_vm0, %v666_v43 }
  0x31   : > { %1627 = vmatpush3.xpose.msk.msra.mxu0 %vm273_vm0, %v666_v43  ;;  %1763 = vmatpush3.xpose.msk.msra.mxu1 %vm273_vm0, %v666_v43  ;;  %v406_v43 = vsel %vm273_vm0, %v253_v36, 0.0  ;;  %v259_v36 = vmul.f32 %v2402_v26, %v2402_v26 }
  0x32   : > { %386 = vadd.xlane.f32.xlu1 %v385_v44  ;;  %290 = vadd.xlane.f32.xlu0 %v289_v45  ;;  %v310_v44 = vsel %vm273_vm0, %v221_v37, 0.0  ;;  %v254_v45 = vmul.f32 %v2326_v38, %v2326_v38 }
  0x33   : > { %1628 = vmatprep.subr.msk.mxu0 %vm273_vm0, %v665_v50  ;;  %1748 = vmatprep.subr.msk.mxu1 %vm273_vm0, %v665_v50 }
  0x35   : > { %1629 = vmatpush3.xpose.msk.msra.mxu0 %vm273_vm0, %v665_v50  ;;  %1764 = vmatpush3.xpose.msk.msra.mxu1 %vm273_vm0, %v665_v50  ;;  %v2348_v50 = vld [vmem:[%s2088_s3 + $0x70] sm:$0xff] }
  0x36   : > { %389 = vadd.xlane.f32.xlu1 %v388_v51  ;;  %293 = vadd.xlane.f32.xlu0 %v292_v52  ;;  %v658_v51 = vld [vmem:[%s2820_s1] sm:$0xff]  ;;  %v409_v52 = vsel %vm273_vm0, %v254_v45, 0.0 }
  0x37   : > { %1630 = vmatprep.subr.msk.mxu0 %vm273_vm0, %v664_v57  ;;  %1749 = vmatprep.subr.msk.mxu1 %vm273_vm0, %v664_v57 }
  0x39   : > { %1631 = vmatpush3.xpose.msk.msra.mxu0 %vm273_vm0, %v664_v57  ;;  %1765 = vmatpush3.xpose.msk.msra.mxu1 %vm273_vm0, %v664_v57  ;;  %v223_v57 = vmul.f32 %v2348_v50, %v2348_v50 }
  0x3a   : > { %392 = vadd.xlane.f32.xlu1 %v391_v58  ;;  %296 = vadd.xlane.f32.xlu0 %v295_v59  ;;  %v2364_v58 = vld [vmem:[%s2088_s3 + $0x178] sm:$0xff] }
  0x3b   : > { %1632 = vmatprep.subr.msk.mxu0 %vm273_vm0, %v663_v0  ;;  %1750 = vmatprep.subr.msk.mxu1 %vm273_vm0, %v663_v0  ;;  %v2367_v59 = vld [vmem:[%s2088_s3 + $0x78] sm:$0xff]  ;;  %v316_v61 = vsel %vm273_vm0, %v223_v57, 0.0 }
  0x3d   : > { %1633 = vmatpush3.xpose.msk.msra.mxu0 %vm273_vm0, %v663_v0  ;;  %1766 = vmatpush3.xpose.msk.msra.mxu1 %vm273_vm0, %v663_v0  ;;  %v256_v0 = vmul.f32 %v2364_v58, %v2364_v58 }
  0x3e   : > { %395 = vadd.xlane.f32.xlu1 %v394_v1  ;;  %299 = vadd.xlane.f32.xlu0 %v298_v2  ;;  %v224_v1 = vmul.f32 %v2367_v59, %v2367_v59  ;;  %v2378_v2 = vld [vmem:[%s2088_s3 + $0x180] sm:$0xff] }
  0x3f   : > { %1634 = vmatprep.subr.msk.mxu0 %vm273_vm0, %v662_v13  ;;  %1751 = vmatprep.subr.msk.mxu1 %vm273_vm0, %v662_v13  ;;  %v415_v7 = vsel %vm273_vm0, %v256_v0, 0.0  ;;  %v2438_v0 = vld [vmem:[%s2088_s3 + $0x1a8] sm:$0xff] }
  0x41   : > { %1635 = vmatpush3.xpose.msk.msra.mxu0 %vm273_vm0, %v662_v13  ;;  %1767 = vmatpush3.xpose.msk.msra.mxu1 %vm273_vm0, %v662_v13  ;;  %v319_v13 = vsel %vm273_vm0, %v224_v1, 0.0  ;;  %v2441_v1 = vld [vmem:[%s2088_s3 + $0xa8] sm:$0xff] }
  0x42   : > { %398 = vadd.xlane.f32.xlu1 %v397_v14  ;;  %302 = vadd.xlane.f32.xlu0 %v301_v15  ;;  %v257_v14 = vmul.f32 %v2378_v2, %v2378_v2  ;;  %v225_v15 = vmul.f32 %v2381_v6, %v2381_v6 }
  0x43   : > { %1636 = vmatprep.subr.msk.mxu0 %vm273_vm0, %v661_v22  ;;  %1752 = vmatprep.subr.msk.mxu1 %vm273_vm0, %v661_v22 }
  0x45   : > { %1637 = vmatpush3.xpose.msk.msra.mxu0 %vm273_vm0, %v661_v22  ;;  %1768 = vmatpush3.xpose.msk.msra.mxu1 %vm273_vm0, %v661_v22  ;;  %v418_v22 = vsel %vm273_vm0, %v257_v14, 0.0  ;;  %v262_v14 = vmul.f32 %v2438_v0, %v2438_v0 }
  0x46   : > { %401 = vadd.xlane.f32.xlu1 %v400_v23  ;;  %305 = vadd.xlane.f32.xlu0 %v304_v24  ;;  %v322_v23 = vsel %vm273_vm0, %v225_v15, 0.0  ;;  %v258_v24 = vmul.f32 %v2390_v16, %v2390_v16  ;;  %v230_v15 = vmul.f32 %v2441_v1, %v2441_v1 }
  0x47   : > { %1638 = vmatprep.subr.msk.mxu0 %vm273_vm0, %v660_v31  ;;  %1753 = vmatprep.subr.msk.mxu1 %vm273_vm0, %v660_v31 }
  0x49   : > { %1639 = vmatpush3.xpose.msk.msra.mxu0 %vm273_vm0, %v660_v31  ;;  %1769 = vmatpush3.xpose.msk.msra.mxu1 %vm273_vm0, %v660_v31  ;;  %v2405_v31 = vld [vmem:[%s2088_s3 + $0x90] sm:$0xff] }
  0x4a   : > { %404 = vadd.xlane.f32.xlu1 %v403_v32  ;;  %308 = vadd.xlane.f32.xlu0 %v307_v33  ;;  %v421_v32 = vsel %vm273_vm0, %v258_v24, 0.0  ;;  %v325_v33 = vsel %vm273_vm0, %v226_v25, 0.0  ;;  %v227_v37 = vmul.f32 %v2405_v31, %v2405_v31  ;;  %v433_v24 = vsel %vm273_vm0, %v262_v14, 0.0  ;;  %v2486_v14 = vld [vmem:[%s2088_s3 + $0x1c8] sm:$0xff] }
  0x4b   : > { %1640 = vmatprep.subr.msk.mxu0 %vm273_vm0, %v659_v40  ;;  %1754 = vmatprep.subr.msk.mxu1 %vm273_vm0, %v659_v40  ;;  %v337_v25 = vsel %vm273_vm0, %v230_v15, 0.0  ;;  %2842 = vst [vmem:[#allocation7_spill] sm:$0xff] %v2486_v14  ;;  %v2489_v15 = vld [vmem:[%s2088_s3 + $0xc8] sm:$0xff] }
  0x4c   : > { %v328_v45 = vsel %vm273_vm0, %v227_v37, 0.0  ;;  %v2465_v37 = vld [vmem:[%s2088_s3 + $0xb8] sm:$0xff]  ;;  %2843 = vst [vmem:[#allocation8_spill] sm:$0xff] %v2489_v15 }
  0x4d   : > { %1641 = vmatpush3.xpose.msk.msra.mxu0 %vm273_vm0, %v659_v40  ;;  %1770 = vmatpush3.xpose.msk.msra.mxu1 %vm273_vm0, %v659_v40  ;;  %v2414_v40 = vld [vmem:[%s2088_s3 + $0x198] sm:$0xff] }
  0x4e   : > { %407 = vadd.xlane.f32.xlu1 %v406_v43  ;;  %311 = vadd.xlane.f32.xlu0 %v310_v44  ;;  %v2417_v43 = vld [vmem:[%s2088_s3 + $0x98] sm:$0xff]  ;;  %v424_v44 = vsel %vm273_vm0, %v259_v36, 0.0  ;;  %v260_v46 = vmul.f32 %v2414_v40, %v2414_v40 }
  0x4f   : > { %1642 = vmatprep.subr.msk.mxu0 %vm273_vm0, %v658_v51  ;;  %1755 = vmatprep.subr.msk.mxu1 %vm273_vm0, %v658_v51  ;;  %v2462_v36 = vld [vmem:[%s2088_s3 + $0x1b8] sm:$0xff] }
  0x50   : > { %v427_v54 = vsel %vm273_vm0, %v260_v46, 0.0  ;;  %v264_v46 = vmul.f32 %v2462_v36, %v2462_v36 }
  0x51   : > { %1643 = vmatpush3.xpose.msk.msra.mxu0 %vm273_vm0, %v658_v51  ;;  %1771 = vmatpush3.xpose.msk.msra.mxu1 %vm273_vm0, %v658_v51  ;;  %v228_v51 = vmul.f32 %v2417_v43, %v2417_v43 }
  0x52   : > { %410 = vadd.xlane.f32.xlu1 %v409_v52  ;;  %314 = vadd.xlane.f32.xlu0 %v313_v53  ;;  %v2426_v52 = vld [vmem:[%s2088_s3 + $0x1a0] sm:$0xff] }
  0x53   : > { %v2429_v53 = vld [vmem:[%s2088_s3 + $0xa0] sm:$0xff]  ;;  %v331_v57 = vsel %vm273_vm0, %v228_v51, 0.0  ;;  %v232_v51 = vmul.f32 %v2465_v37, %v2465_v37 }
  0x56   : > { %413 = vadd.xlane.f32.xlu1 %v412_v60  ;;  %317 = vadd.xlane.f32.xlu0 %v316_v61  ;;  %v261_v60 = vmul.f32 %v2426_v52, %v2426_v52  ;;  %v229_v61 = vmul.f32 %v2429_v53, %v2429_v53 }
  0x5a   : > { %416 = vadd.xlane.f32.xlu1 %v415_v7  ;;  %320 = vadd.xlane.f32.xlu0 %v319_v13  ;;  %v430_v7 = vsel %vm273_vm0, %v261_v60, 0.0  ;;  %v334_v13 = vsel %vm273_vm0, %v229_v61, 0.0  ;;  %v439_v60 = vsel %vm273_vm0, %v264_v46, 0.0  ;;  %v343_v61 = vsel %vm273_vm0, %v232_v51, 0.0 }
  0x5e   : > { %419 = vadd.xlane.f32.xlu1 %v418_v22  ;;  %323 = vadd.xlane.f32.xlu0 %v322_v23  ;;  %v2450_v22 = vld [vmem:[%s2088_s3 + $0x1b0] sm:$0xff] }
  0x5f   : > { %v2453_v23 = vld [vmem:[%s2088_s3 + $0xb0] sm:$0xff] }
  0x62   : > { %422 = vadd.xlane.f32.xlu1 %v421_v32  ;;  %326 = vadd.xlane.f32.xlu0 %v325_v33  ;;  %v263_v32 = vmul.f32 %v2450_v22, %v2450_v22  ;;  %v231_v33 = vmul.f32 %v2453_v23, %v2453_v23 }
  0x66   : > { %425 = vadd.xlane.f32.xlu1 %v424_v44  ;;  %329 = vadd.xlane.f32.xlu0 %v328_v45  ;;  %v436_v44 = vsel %vm273_vm0, %v263_v32, 0.0  ;;  %v340_v45 = vsel %vm273_vm0, %v231_v33, 0.0  ;;  %v266_v32 = vmul.f32 %v2486_v14, %v2486_v14  ;;  %v234_v33 = vmul.f32 %v2489_v15, %v2489_v15 }
  0x68   : > { %v445_v46 = vsel %vm273_vm0, %v266_v32, 0.0  ;;  %v349_v51 = vsel %vm273_vm0, %v234_v33, 0.0 }
  0x6a   : > { %428 = vadd.xlane.f32.xlu1 %v427_v54  ;;  %332 = vadd.xlane.f32.xlu0 %v331_v57  ;;  %v2474_v54 = vld [vmem:[%s2088_s3 + $0x1c0] sm:$0xff] }
  0x6b   : > { %2840 = vst [vmem:[#allocation5_spill] sm:$0xff] %v2474_v54  ;;  %v2477_v57 = vld [vmem:[%s2088_s3 + $0xc0] sm:$0xff] }
  0x6c   : > { %2841 = vst [vmem:[#allocation6_spill] sm:$0xff] %v2477_v57 }
  0x6e   : > { %431 = vadd.xlane.f32.xlu1 %v430_v7  ;;  %335 = vadd.xlane.f32.xlu0 %v334_v13  ;;  %v265_v7 = vmul.f32 %v2474_v54, %v2474_v54  ;;  %v233_v13 = vmul.f32 %v2477_v57, %v2477_v57 }
  0x72   : > { %434 = vadd.xlane.f32.xlu1 %v433_v24  ;;  %338 = vadd.xlane.f32.xlu0 %v337_v25  ;;  %v442_v24 = vsel %vm273_vm0, %v265_v7, 0.0  ;;  %v346_v25 = vsel %vm273_vm0, %v233_v13, 0.0  ;;  %v2510_v7 = vld [vmem:[%s2088_s3 + $0x1d8] sm:$0xff] }
  0x73   : > { %2846 = vst [vmem:[#allocation11_spill] sm:$0xff] %v2510_v7  ;;  %v2513_v13 = vld [vmem:[%s2088_s3 + $0xd8] sm:$0xff]  ;;  %v268_v32 = vmul.f32 %v2510_v7, %v2510_v7  ;;  %v2534_v7 = vld [vmem:[%s2088_s3 + $0x1e8] sm:$0xff] }
  0x74   : > { %2847 = vst [vmem:[#allocation12_spill] sm:$0xff] %v2513_v13  ;;  %v236_v33 = vmul.f32 %v2513_v13, %v2513_v13  ;;  %2850 = vst [vmem:[#allocation15_spill] sm:$0xff] %v2534_v7  ;;  %v2537_v13 = vld [vmem:[%s2088_s3 + $0xe8] sm:$0xff] }
  0x75   : > { %2851 = vst [vmem:[#allocation16_spill] sm:$0xff] %v2537_v13 }
  0x76   : > { %437 = vadd.xlane.f32.xlu1 %v436_v44  ;;  %341 = vadd.xlane.f32.xlu0 %v340_v45  ;;  %v2498_v44 = vld [vmem:[%s2088_s3 + $0x1d0] sm:$0xff] }
  0x77   : > { %2844 = vst [vmem:[#allocation9_spill] sm:$0xff] %v2498_v44  ;;  %v2501_v45 = vld [vmem:[%s2088_s3 + $0xd0] sm:$0xff] }
  0x78   : > { %2845 = vst [vmem:[#allocation10_spill] sm:$0xff] %v2501_v45 }
  0x7a   : > { %440 = vadd.xlane.f32.xlu1 %v439_v60  ;;  %344 = vadd.xlane.f32.xlu0 %v343_v61  ;;  %v267_v60 = vmul.f32 %v2498_v44, %v2498_v44  ;;  %v235_v61 = vmul.f32 %v2501_v45, %v2501_v45  ;;  %v2522_v44 = vld [vmem:[%s2088_s3 + $0x1e0] sm:$0xff] }
  0x7b   : > { %2848 = vst [vmem:[#allocation13_spill] sm:$0xff] %v2522_v44  ;;  %v2525_v45 = vld [vmem:[%s2088_s3 + $0xe0] sm:$0xff] }
  0x7c   : > { %2849 = vst [vmem:[#allocation14_spill] sm:$0xff] %v2525_v45 }
  0x7e   : > { %443 = vadd.xlane.f32.xlu1 %v442_v24  ;;  %347 = vadd.xlane.f32.xlu0 %v346_v25  ;;  %v448_v24 = vsel %vm273_vm0, %v267_v60, 0.0  ;;  %v352_v25 = vsel %vm273_vm0, %v235_v61, 0.0  ;;  %v269_v60 = vmul.f32 %v2522_v44, %v2522_v44  ;;  %v237_v61 = vmul.f32 %v2525_v45, %v2525_v45  ;;  %v2546_v44 = vld [vmem:[%s2088_s3 + $0x1f0] sm:$0xff] }
  0x7f   : > { %2852 = vst [vmem:[#allocation17_spill] sm:$0xff] %v2546_v44  ;;  %v2549_v45 = vld [vmem:[%s2088_s3 + $0xf0] sm:$0xff] }
  0x80   : > { %2853 = vst [vmem:[#allocation18_spill] sm:$0xff] %v2549_v45 }
  0x82   : > { %446 = vadd.xlane.f32.xlu1 %v445_v46  ;;  %350 = vadd.xlane.f32.xlu0 %v349_v51  ;;  %v451_v46 = vsel %vm273_vm0, %v268_v32, 0.0  ;;  %v355_v51 = vsel %vm273_vm0, %v236_v33, 0.0  ;;  %v270_v32 = vmul.f32 %v2534_v7, %v2534_v7  ;;  %v238_v33 = vmul.f32 %v2537_v13, %v2537_v13  ;;  %v2561_v7 = vld [vmem:[%s2088_s3 + $0xf8] sm:$0xff] }
  0x83   : > { %2855 = vst [vmem:[#allocation20_spill] sm:$0xff] %v2561_v7 }
  0x84   : > { %v457_v15 = vsel %vm273_vm0, %v270_v32, 0.0  ;;  %v240_v32 = vmul.f32 %v2561_v7, %v2561_v7 }
  0x86   : > { %449 = vadd.xlane.f32.xlu1 %v448_v24  ;;  %353 = vadd.xlane.f32.xlu0 %v352_v25  ;;  %v454_v24 = vsel %vm273_vm0, %v269_v60, 0.0  ;;  %v358_v25 = vsel %vm273_vm0, %v237_v61, 0.0  ;;  %v239_v60 = vmul.f32 %v2549_v45, %v2549_v45  ;;  %v2558_v61 = vld [vmem:[%s2088_s3 + $0x1f8] sm:$0xff]  ;;  %v367_v45 = vsel %vm273_vm0, %v240_v32, 0.0  ;;  %s135_s3 = sand.u32 1, %s1993_s10  }
  0x87   : > { %2854 = vst [vmem:[#allocation19_spill] sm:$0xff] %v2558_v61  ;;  %s1443_s21 = sshll.u32 %s135_s3, 9  ;;  %s2779_s13 = scalar_lea.sflag [#allocation3], %s135_s3 }
  0x88   : > { %s2702_s22 = scalar_lea.vmem [#allocation2], %s1443_s21 }
  0x89   : > { %s1377_s24 = sshll.u32 %s2702_s22, 4  ;;  %s2772_s24 = int_to_ptr.vmem [resolvable:$true] %s1377_s24 }
  0x8a   : > { %452 = vadd.xlane.f32.xlu1 %v451_v46  ;;  %356 = vadd.xlane.f32.xlu0 %v355_v51  ;;  %v361_v46 = vsel %vm273_vm0, %v238_v33, 0.0  ;;  %v271_v51 = vmul.f32 %v2546_v44, %v2546_v44  ;;  %s1941_s28 = scalar_lea.vmem %s2772_s24, 8192  ;;  %p1948_p0 = scmp.lt.s32.totalorder %s2772_s24, %s1946_s30 }
  0x8b   : > { %p1942_p11 = scmp.ne.s32.totalorder %s2772_s24, %s1941_s28  ;;  %p1949_p1 = scmp.lt.s32.totalorder %s1947_s4, %s1941_s28 }
  0x8c   : > { %v460_v13 = vsel %vm273_vm0, %v271_v51, 0.0 }
  0x8d   : > { %p1943_p12 = pnand %p1942_p11, %p2059_p5  ;;  %p1950_p2 = por %p1949_p1, %p1948_p0 }
  0x8e   : > { %455 = vadd.xlane.f32.xlu1 %v454_v24  ;;  %359 = vadd.xlane.f32.xlu0 %v358_v25  ;;  %v364_v24 = vsel %vm273_vm0, %v239_v60, 0.0  ;;  %v272_v25 = vmul.f32 %v2558_v61, %v2558_v61 }
  0x8f   : > { %p1944_p13 = pneg %p1943_p12 }
  0x90   : > { %v463_v33 = vsel %vm273_vm0, %v272_v25, 0.0 }
  0x91   : > { %p1951_p3 = pnand %p1950_p2, %p1944_p13 }
  0x92   : > { %458 = vadd.xlane.f32.xlu1 %v457_v15  ;;  %362 = vadd.xlane.f32.xlu0 %v361_v46 }
  0x96   : > { %461 = vadd.xlane.f32.xlu1 %v460_v13  ;;  %365 = vadd.xlane.f32.xlu0 %v364_v24 }
  0x9a   : > { %464 = vadd.xlane.f32.xlu1 %v463_v33  ;;  %368 = vadd.xlane.f32.xlu0 %v367_v45 }
  0xa7   : > { %v279_v15 = vpop.xlane.xlu1 %278  ;;  %v276_v46 = vpop.xlane.xlu0 %275 }
  0xa8   : > { %v467_v44 = vmax.f32 %v279_v15, 1e-24  ;;  %v466_v51 = vmax.f32 %v276_v46, 1e-24 }
  0xaa   : > { %1813 = vrsqrt.f32 %v467_v44 }
  0xab   : > { %1815 = vrsqrt.f32 %v466_v51  ;;  %v375_v60 = vpop.xlane.xlu1 %374  ;;  %v372_v14 = vpop.xlane.xlu0 %371 }
  0xac   : > { %v499_v61 = vmax.f32 %v375_v60, 1e-24  ;;  %v498_v57 = vmax.f32 %v372_v14, 1e-24 }
  0xae   : > { %1817 = vrsqrt.f32 %v499_v61 }
  0xaf   : > { %1819 = vrsqrt.f32 %v498_v57  ;;  %v378_v13 = vpop.xlane.xlu1 %377  ;;  %v282_v24 = vpop.xlane.xlu0 %281 }
  0xb0   : > { %v500_v7 = vmax.f32 %v378_v13, 1e-24  ;;  %v468_v25 = vmax.f32 %v282_v24, 1e-24 }
  0xb2   : > { %1821 = vrsqrt.f32 %v500_v7 }
  0xb3   : > { %1823 = vrsqrt.f32 %v468_v25  ;;  %v381_v32 = vpop.xlane.xlu1 %380  ;;  %v285_v45 = vpop.xlane.xlu0 %284 }
  0xb4   : > { %v501_v33 = vmax.f32 %v381_v32, 1e-24  ;;  %v469_v54 = vmax.f32 %v285_v45, 1e-24 }
  0xb6   : > { %1825 = vrsqrt.f32 %v501_v33 }
  0xb7   : > { %v1814_v15 = vpop.eup %1813  ;;  %1827 = vrsqrt.f32 %v469_v54  ;;  %v384_v44 = vpop.xlane.xlu1 %383 }
  0xb8   : > { %v288_v46 = vpop.xlane.xlu0 %287  ;;  %v1816_v51 = vpop.eup %1815  ;;  %v502_v60 = vmax.f32 %v384_v44, 1e-24  ;;  %v595_v57 = vmul.f32 %v1814_v15, %v2093_v3 }
  0xb9   : > { %v470_v14 = vmax.f32 %v288_v46, 1e-24  ;;  %v594_v61 = vmul.f32 %v1816_v51, %v2096_v4 }
  0xba   : > { %1829 = vrsqrt.f32 %v502_v60 }
  0xbb   : > { %v1818_v13 = vpop.eup %1817  ;;  %1831 = vrsqrt.f32 %v470_v14  ;;  %1644 = vmatprep.mubr.msk.f32.mxu0 %vm273_vm0, %v594_v61  ;;  %v387_v7 = vpop.xlane.xlu1 %386 }
  0xbc   : > { %v291_v24 = vpop.xlane.xlu0 %290  ;;  %v1820_v25 = vpop.eup %1819  ;;  %v503_v32 = vmax.f32 %v387_v7, 1e-24  ;;  %1645 = vmatmul.mubr.msk.f32.vlgmr.msra.gmra.mxu0 %vm273_vm0, %v595_v57  ;;  %v627_v45 = vmul.f32 %v1818_v13, %v2099_v5 }
  0xbd   : > { %v471_v54 = vmax.f32 %v291_v24, 1e-24  ;;  %v626_v33 = vmul.f32 %v1820_v25, %v2110_v9 }
  0xbe   : > { %1833 = vrsqrt.f32 %v503_v32 }
  0xbf   : > { %v1822_v3 = vpop.eup %1821  ;;  %1835 = vrsqrt.f32 %v471_v54  ;;  %1692 = vmatprep.mubr.msk.f32.mxu1 %vm273_vm0, %v626_v33  ;;  %v390_v4 = vpop.xlane.xlu1 %389 }
  0xc0   : > { %v294_v15 = vpop.xlane.xlu0 %293  ;;  %v1824_v44 = vpop.eup %1823  ;;  %v504_v46 = vmax.f32 %v390_v4, 1e-24  ;;  %1693 = vmatmul.mubr.msk.f32.vlgmr.msra.gmra.mxu1 %vm273_vm0, %v627_v45  ;;  %v628_v60 = vmul.f32 %v1822_v3, %v2115_v11 }
  0xc1   : > { %v472_v51 = vmax.f32 %v294_v15, 1e-24  ;;  %v596_v14 = vmul.f32 %v1824_v44, %v2118_v12 }
  0xc2   : > { %1837 = vrsqrt.f32 %v504_v46  ;;  %1695 = vmatprep.mubr.msk.f32.mxu1 %vm273_vm0, %v628_v60 }
  0xc3   : > { %v1826_v5 = vpop.eup %1825  ;;  %1839 = vrsqrt.f32 %v472_v51  ;;  %1647 = vmatprep.mubr.msk.f32.mxu0 %vm273_vm0, %v596_v14  ;;  %v393_v9 = vpop.xlane.xlu1 %392 }
  0xc4   : > { %v297_v57 = vpop.xlane.xlu0 %296  ;;  %v1828_v61 = vpop.eup %1827  ;;  %v505_v13 = vmax.f32 %v393_v9, 1e-24  ;;  %v629_v24 = vmul.f32 %v1826_v5, %v2136_v20 }
  0xc5   : > { %v473_v7 = vmax.f32 %v297_v57, 1e-24  ;;  %v597_v25 = vmul.f32 %v1828_v61, %v2139_v21 }
  0xc6   : > { %1841 = vrsqrt.f32 %v505_v13  ;;  %1696 = vmatmul.mubr.msk.f32.gmra.mxu1 %vm273_vm0, %v629_v24 }
  0xc7   : > { %v1830_v11 = vpop.eup %1829  ;;  %1843 = vrsqrt.f32 %v473_v7  ;;  %1648 = vmatmul.mubr.msk.f32.gmra.mxu0 %vm273_vm0, %v597_v25  ;;  %v396_v12 = vpop.xlane.xlu1 %395 }
  0xc8   : > { %v300_v32 = vpop.xlane.xlu0 %299  ;;  %v1832_v54 = vpop.eup %1831  ;;  %v506_v45 = vmax.f32 %v396_v12, 1e-24  ;;  %v630_v3 = vmul.f32 %v1830_v11, %v2155_v27 }
  0xc9   : > { %v474_v33 = vmax.f32 %v300_v32, 1e-24  ;;  %v598_v4 = vmul.f32 %v1832_v54, %v2158_v28 }
  0xca   : > { %1845 = vrsqrt.f32 %v506_v45  ;;  %1698 = vmatprep.mubr.msk.f32.mxu1 %vm273_vm0, %v630_v3 }
  0xcb   : > { %v1834_v20 = vpop.eup %1833  ;;  %1847 = vrsqrt.f32 %v474_v33  ;;  %1650 = vmatprep.mubr.msk.f32.mxu0 %vm273_vm0, %v598_v4  ;;  %v399_v21 = vpop.xlane.xlu1 %398 }
  0xcc   : > { %v303_v15 = vpop.xlane.xlu0 %302  ;;  %v1836_v44 = vpop.eup %1835  ;;  %v507_v46 = vmax.f32 %v399_v21, 1e-24  ;;  %v631_v60 = vmul.f32 %v1834_v20, %v2174_v34 }
  0xcd   : > { %v475_v51 = vmax.f32 %v303_v15, 1e-24  ;;  %v599_v14 = vmul.f32 %v1836_v44, %v2177_v35 }
  0xce   : > { %1849 = vrsqrt.f32 %v507_v46  ;;  %1699 = vmatmul.mubr.msk.f32.gmra.mxu1 %vm273_vm0, %v631_v60 }
  0xcf   : > { %v1838_v27 = vpop.eup %1837  ;;  %1851 = vrsqrt.f32 %v475_v51  ;;  %1651 = vmatmul.mubr.msk.f32.gmra.mxu0 %vm273_vm0, %v599_v14  ;;  %v402_v28 = vpop.xlane.xlu1 %401 }
  0xd0   : > { %v306_v5 = vpop.xlane.xlu0 %305  ;;  %v1840_v9 = vpop.eup %1839  ;;  %v508_v57 = vmax.f32 %v402_v28, 1e-24  ;;  %v632_v13 = vmul.f32 %v1838_v27, %v2193_v41 }
  0xd1   : > { %v476_v61 = vmax.f32 %v306_v5, 1e-24  ;;  %v600_v7 = vmul.f32 %v1840_v9, %v2196_v42 }
  0xd2   : > { %1853 = vrsqrt.f32 %v508_v57  ;;  %1701 = vmatprep.mubr.msk.f32.mxu1 %vm273_vm0, %v632_v13 }
  0xd3   : > { %v1842_v34 = vpop.eup %1841  ;;  %1855 = vrsqrt.f32 %v476_v61  ;;  %1653 = vmatprep.mubr.msk.f32.mxu0 %vm273_vm0, %v600_v7  ;;  %v405_v35 = vpop.xlane.xlu1 %404 }
  0xd4   : > { %v309_v24 = vpop.xlane.xlu0 %308  ;;  %v1844_v25 = vpop.eup %1843  ;;  %v509_v11 = vmax.f32 %v405_v35, 1e-24  ;;  %v633_v32 = vmul.f32 %v1842_v34, %v2212_v48 }
  0xd5   : > { %v477_v12 = vmax.f32 %v309_v24, 1e-24  ;;  %v601_v54 = vmul.f32 %v1844_v25, %v2215_v49 }
  0xd6   : > { %1857 = vrsqrt.f32 %v509_v11  ;;  %1702 = vmatmul.mubr.msk.f32.gmra.mxu1 %vm273_vm0, %v633_v32 }
  0xd7   : > { %v1846_v41 = vpop.eup %1845  ;;  %1859 = vrsqrt.f32 %v477_v12  ;;  %1654 = vmatmul.mubr.msk.f32.gmra.mxu0 %vm273_vm0, %v601_v54  ;;  %v408_v42 = vpop.xlane.xlu1 %407 }
  0xd8   : > { %v312_v45 = vpop.xlane.xlu0 %311  ;;  %v1848_v33 = vpop.eup %1847  ;;  %v510_v3 = vmax.f32 %v408_v42, 1e-24  ;;  %v634_v20 = vmul.f32 %v1846_v41, %v2231_v55 }
  0xd9   : > { %v478_v4 = vmax.f32 %v312_v45, 1e-24  ;;  %v602_v21 = vmul.f32 %v1848_v33, %v2234_v56 }
  0xda   : > { %1861 = vrsqrt.f32 %v510_v3  ;;  %1704 = vmatprep.mubr.msk.f32.mxu1 %vm273_vm0, %v634_v20 }
  0xdb   : > { %v1850_v48 = vpop.eup %1849  ;;  %1863 = vrsqrt.f32 %v478_v4  ;;  %1656 = vmatprep.mubr.msk.f32.mxu0 %vm273_vm0, %v602_v21  ;;  %v411_v49 = vpop.xlane.xlu1 %410 }
  0xdc   : > { %v315_v15 = vpop.xlane.xlu0 %314  ;;  %v1852_v44 = vpop.eup %1851  ;;  %v511_v46 = vmax.f32 %v411_v49, 1e-24  ;;  %v635_v60 = vmul.f32 %v1850_v48, %v2250_v62 }
  0xdd   : > { %v479_v51 = vmax.f32 %v315_v15, 1e-24  ;;  %v603_v14 = vmul.f32 %v1852_v44, %v2253_v63 }
  0xde   : > { %1865 = vrsqrt.f32 %v511_v46  ;;  %1705 = vmatmul.mubr.msk.f32.gmra.mxu1 %vm273_vm0, %v635_v60 }
  0xdf   : > { %v1854_v55 = vpop.eup %1853  ;;  %1867 = vrsqrt.f32 %v479_v51  ;;  %1657 = vmatmul.mubr.msk.f32.gmra.mxu0 %vm273_vm0, %v603_v14  ;;  %v414_v56 = vpop.xlane.xlu1 %413 }
  0xe0   : > { %v318_v27 = vpop.xlane.xlu0 %317  ;;  %v1856_v28 = vpop.eup %1855  ;;  %v512_v5 = vmax.f32 %v414_v56, 1e-24  ;;  %v636_v57 = vmul.f32 %v1854_v55, %v2269_v8 }
  0xe1   : > { %v480_v9 = vmax.f32 %v318_v27, 1e-24  ;;  %v604_v61 = vmul.f32 %v1856_v28, %v2272_v10 }
  0xe2   : > { %1869 = vrsqrt.f32 %v512_v5  ;;  %1707 = vmatprep.mubr.msk.f32.mxu1 %vm273_vm0, %v636_v57 }
  0xe3   : > { %v1858_v62 = vpop.eup %1857  ;;  %1871 = vrsqrt.f32 %v480_v9  ;;  %1659 = vmatprep.mubr.msk.f32.mxu0 %vm273_vm0, %v604_v61  ;;  %v417_v63 = vpop.xlane.xlu1 %416 }
  0xe4   : > { %v321_v13 = vpop.xlane.xlu0 %320  ;;  %v1860_v7 = vpop.eup %1859  ;;  %v513_v34 = vmax.f32 %v417_v63, 1e-24  ;;  %v637_v24 = vmul.f32 %v1858_v62, %v2288_v18 }
  0xe5   : > { %v481_v35 = vmax.f32 %v321_v13, 1e-24  ;;  %v605_v25 = vmul.f32 %v1860_v7, %v2291_v19 }
  0xe6   : > { %1873 = vrsqrt.f32 %v513_v34  ;;  %1708 = vmatmul.mubr.msk.f32.gmra.mxu1 %vm273_vm0, %v637_v24 }
  0xe7   : > { %v1862_v8 = vpop.eup %1861  ;;  %1875 = vrsqrt.f32 %v481_v35  ;;  %1660 = vmatmul.mubr.msk.f32.gmra.mxu0 %vm273_vm0, %v605_v25  ;;  %v420_v10 = vpop.xlane.xlu1 %419 }
  0xe8   : > { %v324_v11 = vpop.xlane.xlu0 %323  ;;  %v1864_v12 = vpop.eup %1863  ;;  %v514_v32 = vmax.f32 %v420_v10, 1e-24  ;;  %v638_v41 = vmul.f32 %v1862_v8, %v2307_v29 }
  0xe9   : > { %v482_v54 = vmax.f32 %v324_v11, 1e-24  ;;  %v606_v42 = vmul.f32 %v1864_v12, %v2310_v30 }
  0xea   : > { %1877 = vrsqrt.f32 %v514_v32  ;;  %1710 = vmatprep.mubr.msk.f32.mxu1 %vm273_vm0, %v638_v41 }
  0xeb   : > { %v1866_v18 = vpop.eup %1865  ;;  %1879 = vrsqrt.f32 %v482_v54  ;;  %1662 = vmatprep.mubr.msk.f32.mxu0 %vm273_vm0, %v606_v42  ;;  %v423_v19 = vpop.xlane.xlu1 %422 }
  0xec   : > { %v327_v45 = vpop.xlane.xlu0 %326  ;;  %v1868_v33 = vpop.eup %1867  ;;  %v515_v3 = vmax.f32 %v423_v19, 1e-24  ;;  %v639_v20 = vmul.f32 %v1866_v18, %v2326_v38 }
  0xed   : > { %v483_v4 = vmax.f32 %v327_v45, 1e-24  ;;  %v607_v21 = vmul.f32 %v1868_v33, %v2329_v39 }
  0xee   : > { %1881 = vrsqrt.f32 %v515_v3  ;;  %1711 = vmatmul.mubr.msk.f32.gmra.mxu1 %vm273_vm0, %v639_v20 }
  0xef   : > { %v1870_v29 = vpop.eup %1869  ;;  %1883 = vrsqrt.f32 %v483_v4  ;;  %1663 = vmatmul.mubr.msk.f32.gmra.mxu0 %vm273_vm0, %v607_v21  ;;  %v426_v30 = vpop.xlane.xlu1 %425 }
  0xf0   : > { %v330_v48 = vpop.xlane.xlu0 %329  ;;  %v1872_v49 = vpop.eup %1871  ;;  %v516_v15 = vmax.f32 %v426_v30, 1e-24  ;;  %v640_v46 = vmul.f32 %v1870_v29, %v2345_v47 }
  0xf1   : > { %v484_v44 = vmax.f32 %v330_v48, 1e-24  ;;  %v608_v51 = vmul.f32 %v1872_v49, %v2348_v50 }
  0xf2   : > { %1885 = vrsqrt.f32 %v516_v15  ;;  %1713 = vmatprep.mubr.msk.f32.mxu1 %vm273_vm0, %v640_v46 }
  0xf3   : > { %v1874_v38 = vpop.eup %1873  ;;  %1887 = vrsqrt.f32 %v484_v44  ;;  %1665 = vmatprep.mubr.msk.f32.mxu0 %vm273_vm0, %v608_v51  ;;  %v429_v39 = vpop.xlane.xlu1 %428 }
  0xf4   : > { %v333_v60 = vpop.xlane.xlu0 %332  ;;  %v1876_v14 = vpop.eup %1875  ;;  %v517_v55 = vmax.f32 %v429_v39, 1e-24  ;;  %v641_v27 = vmul.f32 %v1874_v38, %v2364_v58 }
  0xf5   : > { %v485_v56 = vmax.f32 %v333_v60, 1e-24  ;;  %v609_v28 = vmul.f32 %v1876_v14, %v2367_v59 }
  0xf6   : > { %1889 = vrsqrt.f32 %v517_v55  ;;  %1714 = vmatmul.mubr.msk.f32.gmra.mxu1 %vm273_vm0, %v641_v27 }
  0xf7   : > { %v1878_v47 = vpop.eup %1877  ;;  %1891 = vrsqrt.f32 %v485_v56  ;;  %1666 = vmatmul.mubr.msk.f32.gmra.mxu0 %vm273_vm0, %v609_v28  ;;  %v432_v50 = vpop.xlane.xlu1 %431 }
  0xf8   : > { %v336_v5 = vpop.xlane.xlu0 %335  ;;  %v1880_v9 = vpop.eup %1879  ;;  %v518_v57 = vmax.f32 %v432_v50, 1e-24  ;;  %v642_v62 = vmul.f32 %v1878_v47, %v2378_v2 }
  0xf9   : > { %v486_v61 = vmax.f32 %v336_v5, 1e-24  ;;  %v610_v63 = vmul.f32 %v1880_v9, %v2381_v6 }
  0xfa   : > { %1893 = vrsqrt.f32 %v518_v57  ;;  %1716 = vmatprep.mubr.msk.f32.mxu1 %vm273_vm0, %v642_v62 }
  0xfb   : > { %v1882_v58 = vpop.eup %1881  ;;  %1895 = vrsqrt.f32 %v486_v61  ;;  %1668 = vmatprep.mubr.msk.f32.mxu0 %vm273_vm0, %v610_v63  ;;  %v435_v59 = vpop.xlane.xlu1 %434 }
  0xfc   : > { %v339_v13 = vpop.xlane.xlu0 %338  ;;  %v1884_v7 = vpop.eup %1883  ;;  %v519_v34 = vmax.f32 %v435_v59, 1e-24  ;;  %v643_v24 = vmul.f32 %v1882_v58, %v2390_v16  ;;  %v2856_v58 = vld [vmem:[#allocation5_spill] sm:$0xff] }
  0xfd   : > { %v487_v35 = vmax.f32 %v339_v13, 1e-24  ;;  %v611_v25 = vmul.f32 %v1884_v7, %v2393_v17  ;;  %v2857_v13 = vld [vmem:[#allocation6_spill] sm:$0xff] }
  0xfe   : > { %1897 = vrsqrt.f32 %v519_v34  ;;  %1717 = vmatmul.mubr.msk.f32.gmra.mxu1 %vm273_vm0, %v643_v24 }
  0xff   : > { %v1886_v2 = vpop.eup %1885  ;;  %1899 = vrsqrt.f32 %v487_v35  ;;  %1669 = vmatmul.mubr.msk.f32.gmra.mxu0 %vm273_vm0, %v611_v25  ;;  %v438_v6 = vpop.xlane.xlu1 %437 }
 0x100   : > { %v342_v8 = vpop.xlane.xlu0 %341  ;;  %v1888_v10 = vpop.eup %1887  ;;  %v520_v11 = vmax.f32 %v438_v6, 1e-24  ;;  %v644_v32 = vmul.f32 %v1886_v2, %v2402_v26  ;;  %v2858_v2 = vld [vmem:[#allocation7_spill] sm:$0xff] }
 0x101   : > { %v488_v12 = vmax.f32 %v342_v8, 1e-24  ;;  %v612_v54 = vmul.f32 %v1888_v10, %v2405_v31  ;;  %v2859_v8 = vld [vmem:[#allocation8_spill] sm:$0xff] }
 0x102   : > { %1901 = vrsqrt.f32 %v520_v11  ;;  %1719 = vmatprep.mubr.msk.f32.mxu1 %vm273_vm0, %v644_v32 }
 0x103   : > { %v1890_v16 = vpop.eup %1889  ;;  %1903 = vrsqrt.f32 %v488_v12  ;;  %1671 = vmatprep.mubr.msk.f32.mxu0 %vm273_vm0, %v612_v54  ;;  %v441_v17 = vpop.xlane.xlu1 %440 }
 0x104   : > { %v345_v41 = vpop.xlane.xlu0 %344  ;;  %v1892_v42 = vpop.eup %1891  ;;  %v521_v18 = vmax.f32 %v441_v17, 1e-24  ;;  %v645_v45 = vmul.f32 %v1890_v16, %v2414_v40 }
 0x105   : > { %v489_v19 = vmax.f32 %v345_v41, 1e-24  ;;  %v613_v33 = vmul.f32 %v1892_v42, %v2417_v43  ;;  %v2860_v41 = vld [vmem:[#allocation9_spill] sm:$0xff] }
 0x106   : > { %1905 = vrsqrt.f32 %v521_v18  ;;  %1720 = vmatmul.mubr.msk.f32.gmra.mxu1 %vm273_vm0, %v645_v45  ;;  %v2861_v18 = vld [vmem:[#allocation10_spill] sm:$0xff] }
 0x107   : > { %v1894_v26 = vpop.eup %1893  ;;  %1907 = vrsqrt.f32 %v489_v19  ;;  %1672 = vmatmul.mubr.msk.f32.gmra.mxu0 %vm273_vm0, %v613_v33  ;;  %v444_v31 = vpop.xlane.xlu1 %443 }
 0x108   : > { %v348_v3 = vpop.xlane.xlu0 %347  ;;  %v1896_v4 = vpop.eup %1895  ;;  %v522_v20 = vmax.f32 %v444_v31, 1e-24  ;;  %v646_v29 = vmul.f32 %v1894_v26, %v2426_v52 }
 0x109   : > { %v490_v21 = vmax.f32 %v348_v3, 1e-24  ;;  %v614_v30 = vmul.f32 %v1896_v4, %v2429_v53 }
 0x10a   : > { %1909 = vrsqrt.f32 %v522_v20  ;;  %1722 = vmatprep.mubr.msk.f32.mxu1 %vm273_vm0, %v646_v29  ;;  %v2862_v20 = vld [vmem:[#allocation11_spill] sm:$0xff]  ;;  %v2863_v29 = vld [vmem:[#allocation12_spill] sm:$0xff] }
 0x10b   : > { %v1898_v40 = vpop.eup %1897  ;;  %1911 = vrsqrt.f32 %v490_v21  ;;  %1674 = vmatprep.mubr.msk.f32.mxu0 %vm273_vm0, %v614_v30  ;;  %v447_v43 = vpop.xlane.xlu1 %446 }
 0x10c   : > { %v351_v48 = vpop.xlane.xlu0 %350  ;;  %v1900_v49 = vpop.eup %1899  ;;  %v523_v15 = vmax.f32 %v447_v43, 1e-24  ;;  %v647_v46 = vmul.f32 %v1898_v40, %v2438_v0 }
 0x10d   : > { %v491_v44 = vmax.f32 %v351_v48, 1e-24  ;;  %v615_v51 = vmul.f32 %v1900_v49, %v2441_v1  ;;  %v2864_v48 = vld [vmem:[#allocation13_spill] sm:$0xff] }
 0x10e   : > { %1913 = vrsqrt.f32 %v523_v15  ;;  %1723 = vmatmul.mubr.msk.f32.gmra.mxu1 %vm273_vm0, %v647_v46  ;;  %v2865_v15 = vld [vmem:[#allocation14_spill] sm:$0xff] }
 0x10f   : > { %v1902_v52 = vpop.eup %1901  ;;  %1915 = vrsqrt.f32 %v491_v44  ;;  %1675 = vmatmul.mubr.msk.f32.gmra.mxu0 %vm273_vm0, %v615_v51  ;;  %v450_v53 = vpop.xlane.xlu1 %449 }
 0x110   : > { %v354_v38 = vpop.xlane.xlu0 %353  ;;  %v1904_v39 = vpop.eup %1903  ;;  %v524_v60 = vmax.f32 %v450_v53, 1e-24  ;;  %v648_v55 = vmul.f32 %v1902_v52, %v2450_v22  ;;  %v2866_v52 = vld [vmem:[#allocation15_spill] sm:$0xff] }
 0x111   : > { %v492_v14 = vmax.f32 %v354_v38, 1e-24  ;;  %v616_v56 = vmul.f32 %v1904_v39, %v2453_v23  ;;  %v2867_v38 = vld [vmem:[#allocation16_spill] sm:$0xff] }
 0x112   : > { %1917 = vrsqrt.f32 %v524_v60  ;;  %1725 = vmatprep.mubr.msk.f32.mxu1 %vm273_vm0, %v648_v55  ;;  %v2868_v55 = vld [vmem:[#allocation17_spill] sm:$0xff] }
 0x113   : > { %v1906_v0 = vpop.eup %1905  ;;  %1919 = vrsqrt.f32 %v492_v14  ;;  %1677 = vmatprep.mubr.msk.f32.mxu0 %vm273_vm0, %v616_v56  ;;  %v453_v1 = vpop.xlane.xlu1 %452 }
 0x114   : > { %v357_v27 = vpop.xlane.xlu0 %356  ;;  %v1908_v28 = vpop.eup %1907  ;;  %v525_v47 = vmax.f32 %v453_v1, 1e-24  ;;  %v649_v5 = vmul.f32 %v1906_v0, %v2462_v36  ;;  %v2869_v0 = vld [vmem:[#allocation18_spill] sm:$0xff] }
 0x115   : > { %v493_v50 = vmax.f32 %v357_v27, 1e-24  ;;  %v617_v9 = vmul.f32 %v1908_v28, %v2465_v37 }
 0x116   : > { %1921 = vrsqrt.f32 %v525_v47  ;;  %1726 = vmatmul.mubr.msk.f32.gmra.mxu1 %vm273_vm0, %v649_v5  ;;  %v2870_v47 = vld [vmem:[#allocation19_spill] sm:$0xff]  ;;  %v2871_v5 = vld [vmem:[#allocation20_spill] sm:$0xff] }
 0x117   : > { %v1910_v22 = vpop.eup %1909  ;;  %1923 = vrsqrt.f32 %v493_v50  ;;  %1678 = vmatmul.mubr.msk.f32.gmra.mxu0 %vm273_vm0, %v617_v9  ;;  %v456_v23 = vpop.xlane.xlu1 %455 }
 0x118   : > { %v360_v57 = vpop.xlane.xlu0 %359  ;;  %v1912_v61 = vpop.eup %1911  ;;  %v526_v62 = vmax.f32 %v456_v23, 1e-24  ;;  %v650_v59 = vmul.f32 %v1910_v22, %v2856_v58 }
 0x119   : > { %v494_v63 = vmax.f32 %v360_v57, 1e-24  ;;  %v618_v7 = vmul.f32 %v1912_v61, %v2857_v13 }
 0x11a   : > { %1925 = vrsqrt.f32 %v526_v62  ;;  %1728 = vmatprep.mubr.msk.f32.mxu1 %vm273_vm0, %v650_v59 }
 0x11b   : > { %v1914_v36 = vpop.eup %1913  ;;  %1927 = vrsqrt.f32 %v494_v63  ;;  %1680 = vmatprep.mubr.msk.f32.mxu0 %vm273_vm0, %v618_v7  ;;  %v459_v37 = vpop.xlane.xlu1 %458 }
 0x11c   : > { %v363_v34 = vpop.xlane.xlu0 %362  ;;  %v1916_v35 = vpop.eup %1915  ;;  %v527_v24 = vmax.f32 %v459_v37, 1e-24  ;;  %v651_v6 = vmul.f32 %v1914_v36, %v2858_v2 }
 0x11d   : > { %v495_v25 = vmax.f32 %v363_v34, 1e-24  ;;  %v619_v10 = vmul.f32 %v1916_v35, %v2859_v8 }
 0x11e   : > { %1929 = vrsqrt.f32 %v527_v24  ;;  %1729 = vmatmul.mubr.msk.f32.gmra.mxu1 %vm273_vm0, %v651_v6 }
 0x11f   : > { %v1918_v11 = vpop.eup %1917  ;;  %1931 = vrsqrt.f32 %v495_v25  ;;  %1681 = vmatmul.mubr.msk.f32.gmra.mxu0 %vm273_vm0, %v619_v10  ;;  %v462_v12 = vpop.xlane.xlu1 %461 }
 0x120   : > { %v366_v32 = vpop.xlane.xlu0 %365  ;;  %v1920_v54 = vpop.eup %1919  ;;  %v528_v16 = vmax.f32 %v462_v12, 1e-24  ;;  %v652_v42 = vmul.f32 %v1918_v11, %v2860_v41 }
 0x121   : > { %v496_v17 = vmax.f32 %v366_v32, 1e-24  ;;  %v620_v19 = vmul.f32 %v1920_v54, %v2861_v18 }
 0x122   : > { %1933 = vrsqrt.f32 %v528_v16  ;;  %1731 = vmatprep.mubr.msk.f32.mxu1 %vm273_vm0, %v652_v42 }
 0x123   : > { %v1922_v45 = vpop.eup %1921  ;;  %1935 = vrsqrt.f32 %v496_v17  ;;  %1683 = vmatprep.mubr.msk.f32.mxu0 %vm273_vm0, %v620_v19  ;;  %v465_v33 = vpop.xlane.xlu1 %464 }
 0x124   : > { %v369_v26 = vpop.xlane.xlu0 %368  ;;  %v1924_v31 = vpop.eup %1923  ;;  %v529_v3 = vmax.f32 %v465_v33, 1e-24  ;;  %v653_v21 = vmul.f32 %v1922_v45, %v2862_v20 }
 0x125   : > { %v497_v4 = vmax.f32 %v369_v26, 1e-24  ;;  %v621_v30 = vmul.f32 %v1924_v31, %v2863_v29 }
 0x126   : > { %1937 = vrsqrt.f32 %v529_v3  ;;  %1732 = vmatmul.mubr.msk.f32.gmra.mxu1 %vm273_vm0, %v653_v21 }
 0x127   : > { %v1926_v40 = vpop.eup %1925  ;;  %1939 = vrsqrt.f32 %v497_v4  ;;  %1684 = vmatmul.mubr.msk.f32.gmra.mxu0 %vm273_vm0, %v621_v30 }
 0x128   : > { %v1928_v43 = vpop.eup %1927  ;;  %v654_v49 = vmul.f32 %v1926_v40, %v2864_v48 }
 0x129   : > { %v622_v44 = vmul.f32 %v1928_v43, %v2865_v15 }
 0x12a   : > { %1734 = vmatprep.mubr.msk.f32.mxu1 %vm273_vm0, %v654_v49 }
 0x12b   : > { %v1930_v46 = vpop.eup %1929  ;;  %1686 = vmatprep.mubr.msk.f32.mxu0 %vm273_vm0, %v622_v44 }
 0x12c   : > { %v1932_v51 = vpop.eup %1931  ;;  %v655_v53 = vmul.f32 %v1930_v46, %v2866_v52 }
 0x12d   : > { %v623_v39 = vmul.f32 %v1932_v51, %v2867_v38 }
 0x12e   : > { %1735 = vmatmul.mubr.msk.f32.gmra.mxu1 %vm273_vm0, %v655_v53 }
 0x12f   : > { %v1934_v60 = vpop.eup %1933  ;;  %1687 = vmatmul.mubr.msk.f32.gmra.mxu0 %vm273_vm0, %v623_v39 }
 0x130   : > { %v1936_v14 = vpop.eup %1935  ;;  %v656_v56 = vmul.f32 %v1934_v60, %v2868_v55 }
 0x131   : > { %v624_v1 = vmul.f32 %v1936_v14, %v2869_v0 }
 0x132   : > { %1737 = vmatprep.mubr.msk.f32.mxu1 %vm273_vm0, %v656_v56 }
 0x133   : > { %v1938_v27 = vpop.eup %1937  ;;  %1689 = vmatprep.mubr.msk.f32.mxu0 %vm273_vm0, %v624_v1 }
 0x134   : > { %v1940_v28 = vpop.eup %1939  ;;  %v657_v50 = vmul.f32 %v1938_v27, %v2870_v47 }
 0x135   : > { %v625_v9 = vmul.f32 %v1940_v28, %v2871_v5 }
 0x136   : > { %1738 = vmatmul.mubr.msk.f32.gmra.mxu1 %vm273_vm0, %v657_v50 }
 0x137   : > { %1690 = vmatmul.mubr.msk.f32.gmra.mxu0 %vm273_vm0, %v625_v9 }
 0x17c   : > { %v1646_v22 = vpop.f32.mrf.mxu0 }
 0x17d   : > { %1300 = vst [vmem:[%s2702_s22 + $0x8] sm:$0xff] %v1646_v22 }
 0x17e   : > { %v980_v23 = vpop.f32.mrf.mxu0 }
 0x17f   : > { %1299 = vst [vmem:[%s2702_s22] sm:$0xff] %v980_v23 }
 0x180   : > { %v1694_v57 = vpop.f32.mrf.mxu1 }
 0x181   : > { %1332 = vst [vmem:[%s2702_s22 + $0x108] sm:$0xff] %v1694_v57 }
 0x182   : > { %v1140_v61 = vpop.f32.mrf.mxu1 }
 0x183   : > { %1331 = vst [vmem:[%s2702_s22 + $0x100] sm:$0xff] %v1140_v61 }
 0x186   : > { %v1697_v62 = vpop.f32.mrf.mxu1 }
 0x187   : > { %v1649_v63 = vpop.f32.mrf.mxu0  ;;  %1334 = vst [vmem:[%s2702_s22 + $0x118] sm:$0xff] %v1697_v62 }
 0x188   : > { %1302 = vst [vmem:[%s2702_s22 + $0x18] sm:$0xff] %v1649_v63  ;;  %v1150_v58 = vpop.f32.mrf.mxu1 }
 0x189   : > { %v990_v59 = vpop.f32.mrf.mxu0  ;;  %1333 = vst [vmem:[%s2702_s22 + $0x110] sm:$0xff] %v1150_v58 }
 0x18a   : > { %1301 = vst [vmem:[%s2702_s22 + $0x10] sm:$0xff] %v990_v59 }
 0x18e   : > { %v1700_v13 = vpop.f32.mrf.mxu1 }
 0x18f   : > { %v1652_v7 = vpop.f32.mrf.mxu0  ;;  %1336 = vst [vmem:[%s2702_s22 + $0x128] sm:$0xff] %v1700_v13 }
 0x190   : > { %1304 = vst [vmem:[%s2702_s22 + $0x28] sm:$0xff] %v1652_v7  ;;  %v1160_v36 = vpop.f32.mrf.mxu1 }
 0x191   : > { %v1000_v37 = vpop.f32.mrf.mxu0  ;;  %1335 = vst [vmem:[%s2702_s22 + $0x120] sm:$0xff] %v1160_v36 }
 0x192   : > { %1303 = vst [vmem:[%s2702_s22 + $0x20] sm:$0xff] %v1000_v37 }
 0x196   : > { %v1703_v34 = vpop.f32.mrf.mxu1 }
 0x197   : > { %v1655_v35 = vpop.f32.mrf.mxu0  ;;  %1338 = vst [vmem:[%s2702_s22 + $0x138] sm:$0xff] %v1703_v34 }
 0x198   : > { %1306 = vst [vmem:[%s2702_s22 + $0x38] sm:$0xff] %v1655_v35  ;;  %v1170_v24 = vpop.f32.mrf.mxu1 }
 0x199   : > { %v1010_v25 = vpop.f32.mrf.mxu0  ;;  %1337 = vst [vmem:[%s2702_s22 + $0x130] sm:$0xff] %v1170_v24 }
 0x19a   : > { %1305 = vst [vmem:[%s2702_s22 + $0x30] sm:$0xff] %v1010_v25 }
 0x19e   : > { %v1706_v2 = vpop.f32.mrf.mxu1 }
 0x19f   : > { %v1658_v6 = vpop.f32.mrf.mxu0  ;;  %1340 = vst [vmem:[%s2702_s22 + $0x148] sm:$0xff] %v1706_v2 }
 0x1a0   : > { %1308 = vst [vmem:[%s2702_s22 + $0x48] sm:$0xff] %v1658_v6  ;;  %v1180_v8 = vpop.f32.mrf.mxu1 }
 0x1a1   : > { %v1020_v10 = vpop.f32.mrf.mxu0  ;;  %1339 = vst [vmem:[%s2702_s22 + $0x140] sm:$0xff] %v1180_v8 }
 0x1a2   : > { %1307 = vst [vmem:[%s2702_s22 + $0x40] sm:$0xff] %v1020_v10 }
 0x1a6   : > { %v1709_v11 = vpop.f32.mrf.mxu1 }
 0x1a7   : > { %v1661_v12 = vpop.f32.mrf.mxu0  ;;  %1342 = vst [vmem:[%s2702_s22 + $0x158] sm:$0xff] %v1709_v11 }
 0x1a8   : > { %1310 = vst [vmem:[%s2702_s22 + $0x58] sm:$0xff] %v1661_v12  ;;  %v1190_v32 = vpop.f32.mrf.mxu1 }
 0x1a9   : > { %v1030_v54 = vpop.f32.mrf.mxu0  ;;  %1341 = vst [vmem:[%s2702_s22 + $0x150] sm:$0xff] %v1190_v32 }
 0x1aa   : > { %1309 = vst [vmem:[%s2702_s22 + $0x50] sm:$0xff] %v1030_v54 }
 0x1ae   : > { %v1712_v16 = vpop.f32.mrf.mxu1 }
 0x1af   : > { %v1664_v17 = vpop.f32.mrf.mxu0  ;;  %1344 = vst [vmem:[%s2702_s22 + $0x168] sm:$0xff] %v1712_v16 }
 0x1b0   : > { %1312 = vst [vmem:[%s2702_s22 + $0x68] sm:$0xff] %v1664_v17  ;;  %v1200_v41 = vpop.f32.mrf.mxu1 }
 0x1b1   : > { %v1040_v42 = vpop.f32.mrf.mxu0  ;;  %1343 = vst [vmem:[%s2702_s22 + $0x160] sm:$0xff] %v1200_v41 }
 0x1b2   : > { %1311 = vst [vmem:[%s2702_s22 + $0x60] sm:$0xff] %v1040_v42 }
 0x1b6   : > { %v1715_v18 = vpop.f32.mrf.mxu1 }
 0x1b7   : > { %v1667_v19 = vpop.f32.mrf.mxu0  ;;  %1346 = vst [vmem:[%s2702_s22 + $0x178] sm:$0xff] %v1715_v18 }
 0x1b8   : > { %1314 = vst [vmem:[%s2702_s22 + $0x78] sm:$0xff] %v1667_v19  ;;  %v1210_v45 = vpop.f32.mrf.mxu1 }
 0x1b9   : > { %v1050_v33 = vpop.f32.mrf.mxu0  ;;  %1345 = vst [vmem:[%s2702_s22 + $0x170] sm:$0xff] %v1210_v45 }
 0x1ba   : > { %1313 = vst [vmem:[%s2702_s22 + $0x70] sm:$0xff] %v1050_v33 }
 0x1be   : > { %v1718_v26 = vpop.f32.mrf.mxu1 }
 0x1bf   : > { %v1670_v31 = vpop.f32.mrf.mxu0  ;;  %1348 = vst [vmem:[%s2702_s22 + $0x188] sm:$0xff] %v1718_v26 }
 0x1c0   : > { %1316 = vst [vmem:[%s2702_s22 + $0x88] sm:$0xff] %v1670_v31  ;;  %v1220_v3 = vpop.f32.mrf.mxu1 }
 0x1c1   : > { %v1060_v4 = vpop.f32.mrf.mxu0  ;;  %1347 = vst [vmem:[%s2702_s22 + $0x180] sm:$0xff] %v1220_v3 }
 0x1c2   : > { %1315 = vst [vmem:[%s2702_s22 + $0x80] sm:$0xff] %v1060_v4 }
 0x1c6   : > { %v1721_v20 = vpop.f32.mrf.mxu1 }
 0x1c7   : > { %v1673_v21 = vpop.f32.mrf.mxu0  ;;  %1350 = vst [vmem:[%s2702_s22 + $0x198] sm:$0xff] %v1721_v20 }
 0x1c8   : > { %1318 = vst [vmem:[%s2702_s22 + $0x98] sm:$0xff] %v1673_v21  ;;  %v1230_v29 = vpop.f32.mrf.mxu1 }
 0x1c9   : > { %v1070_v30 = vpop.f32.mrf.mxu0  ;;  %1349 = vst [vmem:[%s2702_s22 + $0x190] sm:$0xff] %v1230_v29 }
 0x1ca   : > { %1317 = vst [vmem:[%s2702_s22 + $0x90] sm:$0xff] %v1070_v30 }
 0x1ce   : > { %v1724_v40 = vpop.f32.mrf.mxu1 }
 0x1cf   : > { %v1676_v43 = vpop.f32.mrf.mxu0  ;;  %1352 = vst [vmem:[%s2702_s22 + $0x1a8] sm:$0xff] %v1724_v40 }
 0x1d0   : > { %1320 = vst [vmem:[%s2702_s22 + $0xa8] sm:$0xff] %v1676_v43  ;;  %v1240_v48 = vpop.f32.mrf.mxu1 }
 0x1d1   : > { %v1080_v49 = vpop.f32.mrf.mxu0  ;;  %1351 = vst [vmem:[%s2702_s22 + $0x1a0] sm:$0xff] %v1240_v48 }
 0x1d2   : > { %1319 = vst [vmem:[%s2702_s22 + $0xa0] sm:$0xff] %v1080_v49 }
 0x1d6   : > { %v1727_v15 = vpop.f32.mrf.mxu1 }
 0x1d7   : > { %v1679_v44 = vpop.f32.mrf.mxu0  ;;  %1354 = vst [vmem:[%s2702_s22 + $0x1b8] sm:$0xff] %v1727_v15 }
 0x1d8   : > { %1322 = vst [vmem:[%s2702_s22 + $0xb8] sm:$0xff] %v1679_v44  ;;  %v1250_v46 = vpop.f32.mrf.mxu1 }
 0x1d9   : > { %v1090_v51 = vpop.f32.mrf.mxu0  ;;  %1353 = vst [vmem:[%s2702_s22 + $0x1b0] sm:$0xff] %v1250_v46 }
 0x1da   : > { %1321 = vst [vmem:[%s2702_s22 + $0xb0] sm:$0xff] %v1090_v51 }
 0x1de   : > { %v1730_v52 = vpop.f32.mrf.mxu1 }
 0x1df   : > { %v1682_v53 = vpop.f32.mrf.mxu0  ;;  %1356 = vst [vmem:[%s2702_s22 + $0x1c8] sm:$0xff] %v1730_v52 }
 0x1e0   : > { %1324 = vst [vmem:[%s2702_s22 + $0xc8] sm:$0xff] %v1682_v53  ;;  %v1260_v38 = vpop.f32.mrf.mxu1 }
 0x1e1   : > { %v1100_v39 = vpop.f32.mrf.mxu0  ;;  %1355 = vst [vmem:[%s2702_s22 + $0x1c0] sm:$0xff] %v1260_v38 }
 0x1e2   : > { %1323 = vst [vmem:[%s2702_s22 + $0xc0] sm:$0xff] %v1100_v39 }
 0x1e6   : > { %v1733_v60 = vpop.f32.mrf.mxu1 }
 0x1e7   : > { %v1685_v14 = vpop.f32.mrf.mxu0  ;;  %1358 = vst [vmem:[%s2702_s22 + $0x1d8] sm:$0xff] %v1733_v60 }
 0x1e8   : > { %1326 = vst [vmem:[%s2702_s22 + $0xd8] sm:$0xff] %v1685_v14  ;;  %v1270_v55 = vpop.f32.mrf.mxu1 }
 0x1e9   : > { %v1110_v56 = vpop.f32.mrf.mxu0  ;;  %1357 = vst [vmem:[%s2702_s22 + $0x1d0] sm:$0xff] %v1270_v55 }
 0x1ea   : > { %1325 = vst [vmem:[%s2702_s22 + $0xd0] sm:$0xff] %v1110_v56 }
 0x1ee   : > { %v1736_v0 = vpop.f32.mrf.mxu1 }
 0x1ef   : > { %v1688_v1 = vpop.f32.mrf.mxu0  ;;  %1360 = vst [vmem:[%s2702_s22 + $0x1e8] sm:$0xff] %v1736_v0 }
 0x1f0   : > { %1328 = vst [vmem:[%s2702_s22 + $0xe8] sm:$0xff] %v1688_v1  ;;  %v1280_v27 = vpop.f32.mrf.mxu1 }
 0x1f1   : > { %v1120_v28 = vpop.f32.mrf.mxu0  ;;  %1359 = vst [vmem:[%s2702_s22 + $0x1e0] sm:$0xff] %v1280_v27 }
 0x1f2   : > { %1327 = vst [vmem:[%s2702_s22 + $0xe0] sm:$0xff] %v1120_v28 }
 0x1f6   : > { %v1739_v47 = vpop.f32.mrf.mxu1 }
 0x1f7   : > { %v1691_v50 = vpop.f32.mrf.mxu0  ;;  %1362 = vst [vmem:[%s2702_s22 + $0x1f8] sm:$0xff] %v1739_v47 }
 0x1f8   : > { %1330 = vst [vmem:[%s2702_s22 + $0xf8] sm:$0xff] %v1691_v50  ;;  %v1290_v5 = vpop.f32.mrf.mxu1 }
 0x1f9   : > { %v1130_v9 = vpop.f32.mrf.mxu0  ;;  %1361 = vst [vmem:[%s2702_s22 + $0x1f0] sm:$0xff] %v1290_v5 }
 0x1fa   : > { %1329 = vst [vmem:[%s2702_s22 + $0xf0] sm:$0xff] %v1130_v9 }
 0x1fb   : > { %1954 = shalt.err (!%p1951_p3)
}
 0x1fc   : > { %s1955_s5 = scalar_lea.hbm %s2770_s27, 8192  ;;  %s1959_s8 = scalar_lea.hbm %s2821_s2, 16384 }
 0x1fd   : > { %p1956_p4 = scmp.ne.s32.totalorder %s2770_s27, %s1955_s5  ;;  %p1960_p9 = scmp.lt.s32.totalorder %s2770_s27, %s2821_s2 }
 0x1fe   : > { %p1961_p10 = scmp.lt.s32.totalorder %s1959_s8, %s1955_s5 }
 0x1ff   : > { %p1957_p7 = pnand %p1956_p4, %p2059_p5 }
 0x200   : > { %p1962_p11 = por %p1961_p10, %p1960_p9 }
 0x201   : > { %p1958_p8 = pneg %p1957_p7 }
 0x203   : > { %p1963_p12 = pnand %p1962_p11, %p1958_p8 }
 0x205   : > { %1966 = shalt.err (!%p1963_p12)
}
 0x206   : > { %s2004_s17 = smov 128   ;;  %s2005_s3 = smov 8  }
 0x207   : > { %1772 = dma.vmem_to_hbm [thread:$0]  (%p2059_p5), %s2772_s24, 8192, %s2770_s27, %s2779_s13, %s2004_s17, %s2004_s17, %s2005_s3  }
 0x208 PF: > { %p1778_p13 = scmp.ge.s32.totalorder %s2001_s12, 2  ;;  %s1392_s21 = sand.u32 1, %s1989_s9  }
 0x209   : > { %s1393_s22 = scalar_lea.sflag [#allocation3], %s1392_s21 }
 0x20a   : > { %p1775_p0 = pnand %p1778_p13, %p2063_p6 }
 0x20c   : > { %p1776_p1 = pneg %p1775_p0 }
 0x20e   : > { %1984 = dma.done.wait (%p1776_p1), %s1393_s22, 8192  }
 0x20f   : > { %1986 = vsyncadd (%p1776_p1), %s1393_s22, 4294959104  ;;  %p12_p2 = scmp.ge.s32.totalorder %s2046_s15, 4   ;;  %s2872_s9 = smov %s1993_s10 }
 0x210   : > { %s2873_s10 = smov %s1997_s11  ;;  %s2874_s11 = smov %s2057_s18 }
 0x211   : > { %s2875_s12 = smov %s2046_s15  ;;  %14 = sbr.rel (!%p12_p2) target bundleno = 3 (0x3), region = 63 }
 0x216   :  { %1398 = vsyncpa [#allocation3], 1 }
 0x217   :  { %1400 = vsyncpa [#allocation3 + $0x1], 1 }

</bundles_post_ra>
